<compile_context>
chip_gen: v7x
topology: tpu7x:2x2x1
jax: 0.10.0
libtpu: 0.0.40
codegen_flags: <defaults>
</compile_context>

<pallas_src>
import functools
import math

import jax
import jax.numpy as jnp
from jax import lax
from jax.experimental import pallas as pl
from jax.experimental.pallas import tpu as pltpu


def _posenc_kernel(scal_ref, o_ref, *, d_model, fold, rows, lanes,
                   dropout_p, train):
    """One folded sequence tile per grid step.

    scal_ref: (2,) int32 in SMEM  -> [pos, dropout_seed]
    o_ref   : (rows, lanes)       -> folded PE tile, lanes = fold * d_model
    """
    i = pl.program_id(0)

    # ---- column-only (per-lane) math, O(lanes) work per tile --------------------
    col = lax.broadcasted_iota(jnp.int32, (1, lanes), 1).astype(jnp.float32)
    # q = col // d_model (which packed position this lane holds),
    # d = col %  d_model (feature index).  Float floor is exact here: the 0.5/d_model
    # margin dwarfs the f32 rounding error for lanes <= 8192.
    q = jnp.floor((col + 0.5) * jnp.float32(1.0 / d_model))
    d = col - q * jnp.float32(d_model)
    w = jnp.exp(d * jnp.float32(-math.log(10000.0) / d_model))        # 10000^(-d/dm)
    pos_f = scal_ref[0].astype(jnp.float32)
    # angle(r, c) = (pos + r*fold + q(c)) * w(c); the pi/4 phase of the
    # sin+cos == sqrt(2)*sin(.+pi/4) identity is folded into the per-lane offset.
    a_vec = (pos_f + q) * w + jnp.float32(math.pi / 4.0)              # (1, lanes)
    b_vec = w * jnp.float32(fold)                                     # (1, lanes)

    # ---- per-element path: (rows,1) convert + FMA + sin + mul -------------------
    row = lax.broadcasted_iota(jnp.int32, (rows, 1), 0)
    r = (i * rows + row).astype(jnp.float32)                          # (rows, 1)
    angle = a_vec + r * b_vec                                         # (rows, lanes)

    scale = math.sqrt(2.0)
    if train and dropout_p > 0.0:
        scale = scale / (1.0 - dropout_p)       # keep-scale folded into the constant
    pe = jnp.float32(scale) * jnp.sin(angle)

    if train and dropout_p > 0.0:
        # Distinct, well-separated stream per grid step (seed and step as two words).
        pltpu.prng_seed(scal_ref[1], i)
        bits = pltpu.prng_random_bits((rows, lanes))
        if bits.dtype != jnp.uint32:
            bits = pltpu.bitcast(bits, jnp.uint32)
        thresh = jnp.uint32(min(int(dropout_p * (2 ** 32)), 2 ** 32 - 1))
        pe = jnp.where(bits >= thresh, pe, jnp.float32(0.0))

    o_ref[...] = pe.astype(o_ref.dtype)


def positional_encoding_forward(x, pos=0, *, dropout_p=0.1, train=False, seed=0,
                                out_dtype=jnp.float32):
    """Pallas implementation of PositionalEncoding.forward.

    x   : (S, B, d_model) — only S and d_model are used (as in the PyTorch module)
    pos : start position (runtime scalar)
    returns (S, 1, d_model), matching `self.dropout(self.pe[pos:pos+S])`.
    """
    S = x.shape[0]
    d_model = x.shape[-1]

    # Lane-density fold: pack `fold` consecutive positions per row so the lane axis is
    # always a multiple of 128 (unmasked stores).  Skip only if a row would get absurd.
    fold = 128 // math.gcd(d_model, 128)
    if fold * d_model > 8192:
        fold = 1
    lanes = fold * d_model
    total_rows = -(-S // fold)                        # ceil; padded tail clipped below

    # Cap each output block at ~2 MiB so double-buffered writeback stays well inside the
    # scoped-VMEM budget on every generation (including v7x's 64 MiB physical VMEM).
    bytes_per_row = lanes * jnp.dtype(out_dtype).itemsize
    max_block_rows = max(8, ((2 * 1024 * 1024) // bytes_per_row) // 8 * 8)

    if total_rows >= 16:
        # Always use >= 2 grid steps: shards across v7x's 2 TensorCores ("parallel")
        # and lets step-(i-1) writeback overlap step-i compute on all generations.
        half = -(-total_rows // 2)
        half = -(-half // 8) * 8
        block_rows = min(max_block_rows, half)
        grid = (-(-total_rows // block_rows),)
    else:
        block_rows = total_rows                       # single step, full-array block
        grid = (1,)

    kernel = functools.partial(
        _posenc_kernel, d_model=d_model, fold=fold, rows=block_rows,
        lanes=lanes, dropout_p=float(dropout_p), train=bool(train))

    scal = jnp.array([pos, seed], dtype=jnp.int32)

    out2d = pl.pallas_call(
        kernel,
        out_shape=jax.ShapeDtypeStruct((total_rows, lanes), out_dtype),
        grid_spec=pltpu.PrefetchScalarGridSpec(
            num_scalar_prefetch=1,
            grid=grid,
            in_specs=[],
            out_specs=pl.BlockSpec((block_rows, lanes), lambda i, s: (i, 0)),
        ),
        compiler_params=pltpu.CompilerParams(
            dimension_semantics=("parallel",),
            vmem_limit_bytes=32 * 1024 * 1024,
        ),
    )(scal)

    # Metadata-only: unfold to (padded_S, d_model), clip pad, restore (S, 1, d_model).
    return out2d.reshape(total_rows * fold, d_model)[:S][:, None, :]


def _reference(seq_len, d_model, pos=0, max_len=5000):
    """Pure-JAX reference mirroring the PyTorch module exactly (eval mode)."""
    position = jnp.arange(max_len, dtype=jnp.float32)[:, None]
    div_term = jnp.exp(jnp.arange(d_model, dtype=jnp.float32)
                       * (-math.log(10000.0) / d_model))
    pe = jnp.sin(position * div_term) + jnp.cos(position * div_term)
    return pe[:, None, :][pos:pos + seq_len]


if __name__ == "__main__":
    # Small shapes consistent with the module: seq-first (S, B, d_model).
    S, B, D = 8, 2, 32
    pos = 3
    x = jax.random.normal(jax.random.PRNGKey(0), (S, B, D), dtype=jnp.float32)

    # 1) Eval mode (dropout disabled) — deterministic, checked against the reference.
    out = jax.block_until_ready(
        positional_encoding_forward(x, pos=pos, dropout_p=0.1, train=False))
    ref = _reference(S, D, pos=pos)
    assert out.shape == (S, 1, D), out.shape
    assert jnp.allclose(out, ref, atol=1e-4, rtol=1e-5), "mismatch vs reference"

    # 2) d_model that does not divide 128 (48 -> fold=8, lanes=384) with a ragged S.
    x2 = jax.random.normal(jax.random.PRNGKey(1), (6, 1, 48), dtype=jnp.float32)
    out2 = jax.block_until_ready(positional_encoding_forward(x2, pos=0, train=False))
    assert out2.shape == (6, 1, 48)
    assert jnp.allclose(out2, _reference(6, 48, pos=0), atol=1e-4, rtol=1e-5)

    # 3) Multi-block grid path (>= 2 steps -> megacore sharding / writeback overlap).
    x3 = jax.random.normal(jax.random.PRNGKey(2), (512, 1, 64), dtype=jnp.float32)
    out3 = jax.block_until_ready(positional_encoding_forward(x3, pos=17, train=False))
    assert out3.shape == (512, 1, 64)
    assert jnp.allclose(out3, _reference(512, 64, pos=17), atol=1e-3, rtol=1e-5)

    # 4) bf16 output path (bandwidth-bound v5e option).
    out_bf16 = jax.block_until_ready(
        positional_encoding_forward(x, pos=pos, train=False, out_dtype=jnp.bfloat16))
    assert out_bf16.dtype == jnp.bfloat16 and out_bf16.shape == (S, 1, D)
    assert jnp.allclose(out_bf16.astype(jnp.float32), ref, atol=5e-2)

    # 5) Training-mode dropout uses the TPU hardware PRNG — only exercised on a real
    #    TPU backend (prng_seed has no CPU/interpret lowering).
    if jax.default_backend() == "tpu":
        p = 0.1
        out_tr = jax.block_until_ready(
            positional_encoding_forward(x, pos=pos, dropout_p=p, train=True, seed=123))
        ok = jnp.isclose(out_tr, 0.0, atol=1e-6) | jnp.isclose(
            out_tr, ref / (1.0 - p), atol=1e-4, rtol=1e-5)
        assert bool(jnp.all(ok)), "dropout output is not in {0, pe/(1-p)}"

    print("KERNEL_OK")
</pallas_src>

<mosaic_0001>
module attributes {stable_mosaic.version = 11 : i64} {
  func.func @_posenc_kernel(%arg0: i32, %arg1: memref<2xi32, #tpu.memory_space<smem>>, %arg2: memref<2x128xf32, #tpu.memory_space<vmem>>) attributes {dimension_semantics = [#tpu.dimension_semantics<parallel>], iteration_bounds = array<i64: 1>, scalar_prefetch = 1 : i64, scratch_operands = 0 : i64, tpu.core_type = #tpu.core_type<tc>, window_params = [{transform_indices = @transform_0, window_bounds = array<i64: 2, 128>}]} {
    %0 = tpu.iota {dimensions = array<i32: 1>} : vector<1x128xi32>
    %1 = arith.sitofp %0 : vector<1x128xi32> to vector<1x128xf32>
    %cst = arith.constant 5.000000e-01 : f32
    %2 = vector.broadcast %cst : f32 to vector<1x128xf32>
    %3 = arith.addf %1, %2 : vector<1x128xf32>
    %cst_0 = arith.constant 3.125000e-02 : f32
    %4 = vector.broadcast %cst_0 : f32 to vector<1x128xf32>
    %5 = arith.mulf %3, %4 : vector<1x128xf32>
    %6 = math.floor %5 : vector<1x128xf32>
    %cst_1 = arith.constant 3.200000e+01 : f32
    %7 = vector.broadcast %cst_1 : f32 to vector<1x128xf32>
    %8 = arith.mulf %6, %7 : vector<1x128xf32>
    %9 = arith.subf %1, %8 : vector<1x128xf32>
    %cst_2 = arith.constant -0.287823141 : f32
    %10 = vector.broadcast %cst_2 : f32 to vector<1x128xf32>
    %11 = arith.mulf %9, %10 : vector<1x128xf32>
    %12 = math.exp %11 : vector<1x128xf32>
    %c0 = arith.constant 0 : index
    %13 = memref.load %arg1[%c0] : memref<2xi32, #tpu.memory_space<smem>>
    %14 = arith.sitofp %13 : i32 to f32
    %15 = vector.broadcast %14 : f32 to vector<1x128xf32>
    %16 = arith.addf %15, %6 : vector<1x128xf32>
    %17 = arith.mulf %16, %12 : vector<1x128xf32>
    %cst_3 = arith.constant 0.785398185 : f32
    %18 = vector.broadcast %cst_3 : f32 to vector<1x128xf32>
    %19 = arith.addf %17, %18 : vector<1x128xf32>
    %cst_4 = arith.constant 4.000000e+00 : f32
    %20 = vector.broadcast %cst_4 : f32 to vector<1x128xf32>
    %21 = arith.mulf %12, %20 : vector<1x128xf32>
    %22 = tpu.iota {dimensions = array<i32: 0>} : vector<2x1xi32>
    %c2_i32 = arith.constant 2 : i32
    %23 = arith.muli %arg0, %c2_i32 : i32
    %24 = vector.broadcast %23 : i32 to vector<2x1xi32>
    %25 = arith.addi %24, %22 : vector<2x1xi32>
    %26 = arith.sitofp %25 : vector<2x1xi32> to vector<2x1xf32>
    %27 = vector.broadcast %26 : vector<2x1xf32> to vector<2x128xf32>
    %28 = vector.broadcast %21 : vector<1x128xf32> to vector<2x128xf32>
    %29 = arith.mulf %27, %28 : vector<2x128xf32>
    %30 = vector.broadcast %19 : vector<1x128xf32> to vector<2x128xf32>
    %31 = arith.addf %30, %29 : vector<2x128xf32>
    %32 = math.sin %31 : vector<2x128xf32>
    %cst_5 = arith.constant 1.41421354 : f32
    %33 = vector.broadcast %cst_5 : f32 to vector<2x128xf32>
    %34 = arith.mulf %33, %32 : vector<2x128xf32>
    %c0_6 = arith.constant 0 : index
    %c0_7 = arith.constant 0 : index
    %35 = vector.load %arg2[%c0_6, %c0_7] : memref<2x128xf32, #tpu.memory_space<vmem>>, vector<2x128xf32>
    tpu.vector_store %arg2[%c0_6, %c0_7], %34 {strides = array<i32>} : memref<2x128xf32, #tpu.memory_space<vmem>>, vector<2x128xf32>,
    return
  }
  func.func @transform_0(%arg0: i32, %arg1: memref<2xi32, #tpu.memory_space<smem>>) -> (i32, i32) {
    %c0_i32 = arith.constant 0 : i32
    %c0_i32_0 = arith.constant 0 : i32
    return %arg0, %c0_i32 : i32, i32
  }
}

</mosaic_0001>

<bundles_post_ra>
// kernel: tpu_custom_call.1
= control target key start
LH: loop header
LB: loop body
LE: loop exit
PB: predicated region body
PF: predicated region fallthrough
CT: control target
= control target key end

     0   :  { %s278_s0 = inlined_call_operand.hbm [shape: s32[2], index: 0, kind: input, shape index: {}]   ;;  %s279_s1 = inlined_call_operand.hbm [shape: f32[2,128], index: 1, kind: output, shape index: {}]  }
   0x1   :  { %s179_s8 = scalar_lea.hbm %s278_s0, 16 }
   0x2   :  { %p180_p0 = scmp.ne.s32.totalorder %s278_s0, %s179_s8  ;;  %p183_p1 = scmp.lt.u32.totalorder %s179_s8, %s278_s0 }
   0x4   :  { %p185_p2 = pnand %p183_p1, %p180_p0 }
   0x6   :  { %188 = shalt.err (!%p185_p2)  }
   0x7   :  { %s215_s13 = smov [#allocation3]  }
   0x8   :  { %7 = dma.hbm_to_smem %s278_s0, 16, %s215_s13, [#allocation2] }
   0x9   :  { %211 = dma.done.wait [#allocation2], 16 }
   0xa   :  { %212 = vsyncadd [#allocation2], 4294967280 }
   0xb   :  { %9 = sfence }
   0xc   :  { %10 = vsyncpa [#allocation5], 0  ;;  %v11_v0 = vlaneseq  ;;  %s22_s16 = sld [smem:[#allocation3]]  ;;  %v216_v31 = vmov 683565275   ;;  %s222_s0 = smov [#allocation4]  }
   0xd   :  { %v217_v33 = vmov 2475754826   ;;  %v218_v35 = vmov 2131351028   ;;  %v219_v37 = vmov 2102212464  }
   0xe   :  { %v12_v1 = vand.u32 127, %v11_v0  ;;  %v30_v11 = vshrl.u32 %v11_v0, 7  ;;  %v220_v39 = vmov 920167782   ;;  %v221_v46 = vmov 1326507024  }
   0xf   :  { %s149_s18 = sshll.u32 %s222_s0, 4  ;;  %s150_s18 = int_to_ptr.vmem [resolvable:$true] %s149_s18 }
  0x10   :  { %v13_v2 = vcvt.s32.f32 %v12_v1  ;;  %v34_v13 = vcvt.s32.f32 %v30_v11  ;;  %s189_s19 = scalar_lea.vmem %s150_s18, 32  ;;  %p194_p4 = scmp.lt.s32.totalorder %s150_s18, %s150_s18 }
  0x11   :  { %p190_p3 = scmp.ne.s32.totalorder %s150_s18, %s189_s19  ;;  %p195_p5 = scmp.lt.s32.totalorder %s189_s19, %s189_s19 }
  0x12   :  { %v14_v3 = vadd.f32 0.5, %v13_v2  ;;  %s23_s17 = scvt.s32.f32 %s22_s16 }
  0x13   :  { %p196_p6 = por %p195_p5, %p194_p4 }
  0x14   :  { %v15_v4 = vmul.f32 0.03125, %v14_v3  ;;  %v24_v10 = vstv %s23_s17 }
  0x15   :  { %p197_p7 = pnand %p196_p6, %p190_p3 }
  0x16   :  { %v16_v5 = vfloor.f32 %v15_v4 }
  0x18   :  { %v17_v6 = vmul.f32 32.0, %v16_v5  ;;  %v25_v12 = vadd.f32 %v24_v10, %v16_v5 }
  0x1a   :  { %v18_v7 = vsub.f32 %v13_v2, %v17_v6 }
  0x1c   :  { %v19_v8 = vmul.f32 -0.28782314, %v18_v7 }
  0x1e   :  { %v20_v9 = vmul.f32 1.442695, %v19_v8 }
  0x20   :  { %173 = vpow2.f32 %v20_v9 }
  0x2a   :  { %v174_v14 = vpop.eup %173 }
  0x2b   :  { %v26_v15 = vmul.f32 %v174_v14, %v25_v12  ;;  %v28_v16 = vmul.f32 4.0, %v174_v14 }
  0x2d   :  { %v27_v17 = vadd.f32 0.7853982, %v26_v15  ;;  %v35_v18 = vmul.f32 %v34_v13, %v28_v16 }
  0x2f   :  { %v245_v19 = vadd.f32 %v35_v18, %v27_v17 }
  0x31   :  { %v40_v20 = vand.u32 2139095040, %v245_v19  ;;  %v37_v22 = vand.u32 2147483647, %v245_v19  ;;  %vm39_vm7 = vcmp.lt.s32.totalorder %v245_v19, 0  ;;  %vm129_vm12 = vweird.f32 %v245_v19 }
  0x33   :  { %v41_v21 = vshrl.u32 %v40_v20, 23  ;;  %v44_v25 = vand.u32 8388607, %v37_v22  ;;  %vm38_vm8 = vcmp.le.f32.partialorder %v37_v22, 0.7853982 }
  0x35   :  { %v157_v23 = vadd.s32 4294967169, %v41_v21  ;;  %v45_v28 = vor.u32 8388608, %v44_v25 }
  0x37   :  { %v47_v24 = vadd.s32 1, %v157_v23  ;;  %v85_v48 = vshll.u32 %v45_v28, 8 }
  0x39   :  { %vm48_vm0 = vcmp.gt.s32.totalorder %v47_v24, 0 }
  0x3a   :  { %v49_v26 = vsel %vm48_vm0, %v47_v24, 0 }
  0x3b   :  { %v51_v27 = vand.u32 31, %v49_v26  ;;  %v50_v29 = vshrl.u32 %v49_v26, 5 }
  0x3d   :  { %v52_v30 = vsub.s32 32, %v51_v27  ;;  %v54_v32 = vshll.u32 %v216_v31, %v51_v27  ;;  %v57_v34 = vshll.u32 %v217_v33, %v51_v27  ;;  %v60_v36 = vshll.u32 %v218_v35, %v51_v27 }
  0x3e   :  { %v63_v38 = vshll.u32 %v219_v37, %v51_v27  ;;  %v66_v40 = vshll.u32 %v220_v39, %v51_v27  ;;  %vm69_vm1 = vcmp.lt.s32.totalorder %v50_v29, 1  ;;  %vm72_vm2 = vcmp.lt.s32.totalorder %v50_v29, 4 }
  0x3f   :  { %v53_v41 = vshrl.u32 %v216_v31, %v52_v30  ;;  %v55_v42 = vshrl.u32 %v217_v33, %v52_v30  ;;  %v58_v43 = vshrl.u32 %v218_v35, %v52_v30  ;;  %v61_v44 = vshrl.u32 %v219_v37, %v52_v30 }
  0x40   :  { %v64_v45 = vshrl.u32 %v220_v39, %v52_v30  ;;  %v67_v47 = vshrl.u32 %v221_v46, %v52_v30  ;;  %vm70_vm3 = vcmp.lt.s32.totalorder %v50_v29, 2  ;;  %vm71_vm4 = vcmp.lt.s32.totalorder %v50_v29, 3 }
  0x41   :  { %v56_v49 = vor.u32 %v55_v42, %v54_v32  ;;  %v59_v50 = vor.u32 %v58_v43, %v57_v34  ;;  %v62_v51 = vor.u32 %v61_v44, %v60_v36 }
  0x42   :  { %v65_v52 = vor.u32 %v64_v45, %v63_v38  ;;  %v68_v53 = vor.u32 %v67_v47, %v66_v40 }
  0x43   :  { %v73_v54 = vsel %vm69_vm1, %v53_v41, %v56_v49  ;;  %v74_v55 = vsel %vm72_vm2, %v62_v51, 2102212464  ;;  %v77_v56 = vsel %vm69_vm1, %v56_v49, %v59_v50  ;;  %v81_v57 = vsel %vm69_vm1, %v59_v50, %v62_v51 }
  0x44   :  { %v75_v58 = vsel %vm71_vm4, %v59_v50, %v74_v55  ;;  %v78_v59 = vsel %vm72_vm2, %v65_v52, 920167782  ;;  %v82_v60 = vsel %vm72_vm2, %v68_v53, 1326507024 }
  0x45   :  { %v79_v61 = vsel %vm71_vm4, %v62_v51, %v78_v59  ;;  %v83_v62 = vsel %vm71_vm4, %v65_v52, %v82_v60  ;;  %v76_v63 = vsel %vm70_vm3, %v73_v54, %v75_v58 }
  0x46   :  { %v80_v0 = vsel %vm70_vm3, %v77_v56, %v79_v61  ;;  %v84_v1 = vsel %vm70_vm3, %v81_v57, %v83_v62  ;;  %v92_v6 = vmul.u32 %v85_v48, %v76_v63 }
  0x47   :  { %v251_v2 = vmul.u32.u64.low %v85_v48, %v84_v1  ;;  %v252_v3 = vmul.u32.u64.high %v85_v48, %v84_v1, %v251_v2  ;;  %v254_v4 = vmul.u32.u64.low %v85_v48, %v80_v0  ;;  %v255_v5 = vmul.u32.u64.high %v85_v48, %v80_v0, %v254_v4 }
  0x49   :  { %vm94_vm5 = vc.u32 %v252_v3, %v254_v4  ;;  %v95_v7 = vadd.s32 1, %v255_v5  ;;  %v93_v18 = vadd.s32 %v254_v4, %v252_v3 }
  0x4b   :  { %v96_v8 = vsel %vm94_vm5, %v95_v7, %v255_v5 }
  0x4c   :  { %v97_v9 = vadd.s32 %v96_v8, %v92_v6 }
  0x4e   :  { %v98_v10 = vadd.s32 536870912, %v97_v9 }
  0x50   :  { %v99_v11 = vshrl.u32 %v98_v10, 30 }
  0x52   :  { %v100_v12 = vshll.u32 %v99_v11, 30  ;;  %v123_v32 = vsub.s32 4, %v99_v11 }
  0x54   :  { %v101_v13 = vsub.s32 %v97_v9, %v100_v12  ;;  %v124_v35 = vsel %vm39_vm7, %v123_v32, %v99_v11 }
  0x55   :  { %v126_v38 = vsel %vm38_vm8, 0, %v124_v35 }
  0x56   :  { %v103_v14 = vsub.s32 0, %v101_v13  ;;  %v130_v39 = vadd.s32 3, %v126_v38 }
  0x58   :  { %v158_v15 = vmin.u32 %v103_v14, %v101_v13  ;;  %v131_v40 = vand.u32 3, %v130_v39 }
  0x5a   :  { %v105_v16 = vclz %v158_v15  ;;  %vm136_vm9 = vcmp.eq.s32.totalorder %v131_v40, 2  ;;  %vm133_vm10 = vcmp.eq.s32.totalorder %v131_v40, 0  ;;  %vm132_vm11 = vcmp.lt.s32.totalorder %v131_v40, 2 }
  0x5c   :  { %v159_v17 = vadd.s32 4294967294, %v105_v16 }
  0x5e   :  { %vm160_vm6 = vcmp.lt.s32.totalorder %v159_v17, 0 }
  0x5f   :  { %v108_v20 = vsel %vm160_vm6, 0, %v159_v17 }
  0x60   :  { %v109_v21 = vsub.s32 32, %v108_v20  ;;  %v110_v23 = vshll.u32 %v101_v13, %v108_v20  ;;  %v113_v24 = vsub.s32 4294967266, %v108_v20 }
  0x62   :  { %v111_v25 = vshrl.u32 %v93_v18, %v109_v21  ;;  %v114_v26 = vadd.s32 127, %v113_v24 }
  0x64   :  { %v112_v27 = vor.u32 %v111_v25, %v110_v23  ;;  %v115_v28 = vshll.u32 %v114_v26, 23 }
  0x66   :  { %v116_v29 = vor.u32 4788187, %v115_v28  ;;  %v119_v30 = vcvt.s32.f32 %v112_v27 }
  0x68   :  { %v117_v31 = vand.u32 2147483647, %v116_v29 }
  0x6a   :  { %v120_v33 = vmul.f32 %v119_v30, %v117_v31 }
  0x6c   :  { %v121_v34 = vxor.u32 2147483648, %v120_v33 }
  0x6e   :  { %v122_v36 = vsel %vm39_vm7, %v121_v34, %v120_v33 }
  0x6f   :  { %v125_v37 = vsel %vm38_vm8, %v245_v19, %v122_v36 }
  0x70   :  { %175 = vcosq.f32 %v125_v37 }
  0x71   :  { %177 = vsinq.f32 %v125_v37 }
  0x7a   :  { %v176_v41 = vpop.eup %175 }
  0x7b   :  { %v178_v42 = vpop.eup %177  ;;  %v137_v43 = vxor.u32 2147483648, %v176_v41 }
  0x7c   :  { %v134_v44 = vxor.u32 2147483648, %v178_v42 }
  0x7d   :  { %v138_v22 = vsel %vm136_vm9, %v137_v43, %v178_v42 }
  0x7e   :  { %v135_v45 = vsel %vm133_vm10, %v176_v41, %v134_v44 }
  0x7f   :  { %v139_v46 = vsel %vm132_vm11, %v135_v45, %v138_v22 }
  0x80   :  { %v140_v47 = vsel %vm129_vm12, nan, %v139_v46 }
  0x81   :  { %v141_v48 = vmul.f32 1.4142135, %v140_v47 }
  0x83   :  { %142 = vst [vmem:[#allocation4] sm:$0x3] %v141_v48 }
  0x84   :  { %200 = shalt.err (!%p197_p7)
}
  0x85   :  { %s201_s22 = scalar_lea.hbm %s279_s1, 32 }
  0x86   :  { %p202_p8 = scmp.ne.s32.totalorder %s279_s1, %s201_s22  ;;  %p205_p9 = scmp.lt.u32.totalorder %s201_s22, %s279_s1 }
  0x88   :  { %p207_p10 = pnand %p205_p9, %p202_p8 }
  0x8a   :  { %210 = shalt.err (!%p207_p10)
}
  0x8b   :  { %152 = dma.vmem_to_hbm [thread:$0]  %s150_s18, 32, %s279_s1, [#allocation5]  }
  0x8c   :  { %213 = dma.done.wait [#allocation5], 32  }
  0x8d   :  { %214 = vsyncadd [#allocation5], 4294967264 }
  0x8e   :  { %156 = vsyncpa [#allocation5], 1 }

</bundles_post_ra>
